<compile_context>
chip_gen: v7x
topology: tpu7x:2x2x1
jax: 0.10.0
libtpu: 0.0.40
codegen_flags: <defaults>
</compile_context>

<pallas_src>
import numpy as np
import jax
import jax.numpy as jnp
from jax.experimental import pallas as pl
from jax.experimental.pallas import tpu as pltpu

_NEG_BIG = -1e30  # finite "-infinity" used for padded class lanes


def _round_up(x, m):
    return (x + m - 1) // m * m


def _cdiv(a, b):
    return -(-a // b)


def _itemsize(dt):
    return np.dtype(dt).itemsize


def _pick_batch_tile(batch, max_tile=256):
    """Batch tile: multiple of 8, minimal padding, and >=2 grid steps when possible
    so both of v7x's TensorCores get work ('parallel' batch axis)."""
    b8 = _round_up(max(batch, 1), 8)
    k = _cdiv(b8, max_tile)
    if b8 >= 16:
        k = max(k, 2)
    tile_b = _round_up(_cdiv(b8, k), 8)
    b_pad = _round_up(b8, tile_b)
    return tile_b, b_pad


def _resident_block_spec(block_shape, index_map):
    """BlockSpec for operands whose block never changes (constant index_map):
    request single buffering to halve the VMEM footprint. Falls back to the default
    (double-buffered) spec if this Pallas build lacks pipeline_mode/Buffered."""
    try:
        return pl.BlockSpec(block_shape, index_map, pipeline_mode=pl.Buffered(1))
    except (AttributeError, TypeError):
        return pl.BlockSpec(block_shape, index_map)


# ---------------------------------------------------------------------------
# Kernel 1: resident-weight fused linear + log-softmax (single class block).
# ---------------------------------------------------------------------------
def _fused_linear_logsoftmax_kernel(x_ref, w_ref, b_ref, o_ref, logits_ref):
    # x_ref:      [TILE_B, D]
    # w_ref:      [D, C_PAD]   pre-transposed; padded class columns are exactly zero
    # b_ref:      [1, C_PAD]   padded class entries are -1e30
    # o_ref:      [TILE_B, C_PAD]  log-probs (padded lanes hold ~-1e30, sliced off)
    # logits_ref: [TILE_B, C_PAD]
    logits = jnp.dot(x_ref[...], w_ref[...], preferred_element_type=jnp.float32)
    logits = logits + b_ref[...].astype(jnp.float32)
    # Padded lanes are ~-1e30: never win the max, exp() underflows to 0 -> no masking.
    m = jnp.max(logits, axis=1, keepdims=True)
    shifted = logits - m
    lse = jnp.log(jnp.sum(jnp.exp(shifted), axis=1, keepdims=True))
    o_ref[...] = (shifted - lse).astype(o_ref.dtype)
    logits_ref[...] = logits.astype(logits_ref.dtype)


# ---------------------------------------------------------------------------
# Kernel 2: class-tiled pass producing logits + per-row logsumexp (online).
# ---------------------------------------------------------------------------
def _logits_lse_kernel(x_ref, w_ref, b_ref, logits_ref, lse_ref, m_sc, l_sc):
    j = pl.program_id(1)

    @pl.when(j == 0)
    def _init():
        m_sc[...] = jnp.full_like(m_sc, -jnp.inf)
        l_sc[...] = jnp.zeros_like(l_sc)

    logits = jnp.dot(x_ref[...], w_ref[...], preferred_element_type=jnp.float32)
    logits = logits + b_ref[...].astype(jnp.float32)
    logits_ref[...] = logits.astype(logits_ref.dtype)

    m_prev = m_sc[...]
    m_new = jnp.maximum(m_prev, jnp.max(logits, axis=1, keepdims=True))
    alpha = jnp.exp(m_prev - m_new)
    l_sc[...] = alpha * l_sc[...] + jnp.sum(jnp.exp(logits - m_new), axis=1, keepdims=True)
    m_sc[...] = m_new

    @pl.when(j == pl.num_programs(1) - 1)
    def _finalize():
        lse_ref[...] = m_sc[...] + jnp.log(l_sc[...])


# ---------------------------------------------------------------------------
# Kernel 3: log_probs = logits - lse (second pass of the class-tiled path).
# TODO(synk): fuse this into kernel 2 with an output-revisit scheme to avoid the
#             extra HBM pass over the logits for very large class counts.
# ---------------------------------------------------------------------------
def _sub_lse_kernel(logits_ref, lse_ref, o_ref):
    o_ref[...] = (logits_ref[...].astype(jnp.float32) - lse_ref[...]).astype(o_ref.dtype)


def linear_logsoftmax_classifier(
    x,
    weight,
    bias,
    *,
    batch_tile=256,
    class_tile=512,
    matmul_dtype=None,        # e.g. jnp.bfloat16 for 2-4x MXU throughput if tolerated
    out_dtype=jnp.float32,    # e.g. jnp.bfloat16 to halve the HBM write traffic
    max_resident_weight_bytes=16 * 1024 * 1024,
    force_class_tiling=False,
):
    """Forward of LINEAR_LOGSOFTMAX_CLASSIFIER.

    x: [B, D]; weight: [C, D] (PyTorch nn.Linear layout); bias: [C].
    Returns (log_probs [B, C], logits [B, C]).
    """
    B, D = x.shape
    C, D_w = weight.shape
    assert D == D_w, "weight must be [nclass, input_dim]"

    if matmul_dtype is not None:
        x = x.astype(matmul_dtype)
        weight = weight.astype(matmul_dtype)
    bias = bias.astype(jnp.float32)

    tile_b, b_pad = _pick_batch_tile(B, batch_tile)
    nb = b_pad // tile_b

    in_item = _itemsize(x.dtype)
    out_item = _itemsize(out_dtype)

    # Resident path keeps the whole [D, C_PAD] weight in VMEM (single-buffered).
    resident_c_pad = _round_up(C, 128)
    resident_w_bytes = D * resident_c_pad * in_item
    use_class_tiling = force_class_tiling or resident_w_bytes > max_resident_weight_bytes

    if use_class_tiling:
        tile_c = min(_round_up(class_tile, 128), _round_up(C, 128))
        c_pad = _round_up(C, tile_c)
        nc = c_pad // tile_c
    else:
        tile_c = resident_c_pad
        c_pad = resident_c_pad
        nc = 1

    # Pad + transpose operands. Invariants required by the mask-free softmax:
    # padded weight columns are exactly zero; padded bias lanes are -1e30.
    xp = x if b_pad == B else jnp.pad(x, ((0, b_pad - B), (0, 0)))
    wp = weight if c_pad == C else jnp.pad(weight, ((0, c_pad - C), (0, 0)))
    wp = wp.T  # [D, c_pad] -> plain [M,K]x[K,N] matmul in the kernel
    bp = bias if c_pad == C else jnp.pad(bias, (0, c_pad - C), constant_values=_NEG_BIG)
    bp = bp.reshape(1, c_pad)

    flops = 2 * b_pad * D * c_pad
    transcendentals = b_pad * c_pad
    io_bytes = int(
        xp.size * in_item
        + wp.size * _itemsize(wp.dtype)
        + bp.size * 4
        + 2 * b_pad * c_pad * out_item
    )

    if not use_class_tiling:
        vmem_need = (
            D * c_pad * in_item                  # weight (single-buffered)
            + c_pad * 4                          # bias
            + 2 * tile_b * D * in_item           # x tile (double-buffered)
            + 2 * 2 * tile_b * c_pad * out_item  # two outputs (double-buffered)
        )
        vmem_limit = int(min(max(vmem_need * 5 // 4 + (4 << 20), 32 << 20), 96 << 20))

        log_probs_p, logits_p = pl.pallas_call(
            _fused_linear_logsoftmax_kernel,
            out_shape=(
                jax.ShapeDtypeStruct((b_pad, c_pad), out_dtype),  # log_probs
                jax.ShapeDtypeStruct((b_pad, c_pad), out_dtype),  # logits
            ),
            grid=(nb,),
            in_specs=[
                pl.BlockSpec((tile_b, D), lambda i: (i, 0)),        # x tile over batch
                _resident_block_spec((D, c_pad), lambda i: (0, 0)),  # weight, resident
                _resident_block_spec((1, c_pad), lambda i: (0, 0)),  # bias, resident
            ],
            out_specs=(
                pl.BlockSpec((tile_b, c_pad), lambda i: (i, 0)),
                pl.BlockSpec((tile_b, c_pad), lambda i: (i, 0)),
            ),
            compiler_params=pltpu.CompilerParams(
                dimension_semantics=("parallel",),     # shard batch tiles over TCs (v7x)
                vmem_limit_bytes=vmem_limit,
            ),
            cost_estimate=pl.CostEstimate(
                flops=int(flops),
                transcendentals=int(transcendentals),
                bytes_accessed=io_bytes,
            ),
        )(xp, wp, bp)
        return log_probs_p[:B, :C], logits_p[:B, :C]

    # ----- Class-axis-tiled path (large heads; required on v7x's 64 MiB VMEM). -----
    vmem_need = (
        2 * tile_b * D * in_item
        + 2 * D * tile_c * in_item
        + 2 * tile_c * 4
        + 2 * tile_b * tile_c * out_item
        + 2 * tile_b * 4       # lse output
        + 2 * tile_b * 4       # m/l scratch
    )
    vmem_limit = int(min(max(vmem_need * 5 // 4 + (4 << 20), 32 << 20), 96 << 20))

    logits_p, lse_p = pl.pallas_call(
        _logits_lse_kernel,
        out_shape=(
            jax.ShapeDtypeStruct((b_pad, c_pad), out_dtype),  # logits
            jax.ShapeDtypeStruct((b_pad, 1), jnp.float32),    # per-row logsumexp
        ),
        grid=(nb, nc),
        in_specs=[
            pl.BlockSpec((tile_b, D), lambda i, j: (i, 0)),
            pl.BlockSpec((D, tile_c), lambda i, j: (0, j)),
            pl.BlockSpec((1, tile_c), lambda i, j: (0, j)),
        ],
        out_specs=(
            pl.BlockSpec((tile_b, tile_c), lambda i, j: (i, j)),
            pl.BlockSpec((tile_b, 1), lambda i, j: (i, 0)),
        ),
        scratch_shapes=[
            pltpu.VMEM((tile_b, 1), jnp.float32),  # running max
            pltpu.VMEM((tile_b, 1), jnp.float32),  # running sum-of-exp
        ],
        compiler_params=pltpu.CompilerParams(
            dimension_semantics=("parallel", "arbitrary"),  # class axis is a reduction
            vmem_limit_bytes=vmem_limit,
        ),
        cost_estimate=pl.CostEstimate(
            flops=int(flops),
            transcendentals=int(transcendentals),
            bytes_accessed=io_bytes,
        ),
    )(xp, wp, bp)

    log_probs_p = pl.pallas_call(
        _sub_lse_kernel,
        out_shape=jax.ShapeDtypeStruct((b_pad, c_pad), out_dtype),
        grid=(nb, nc),
        in_specs=[
            pl.BlockSpec((tile_b, tile_c), lambda i, j: (i, j)),
            pl.BlockSpec((tile_b, 1), lambda i, j: (i, 0)),
        ],
        out_specs=pl.BlockSpec((tile_b, tile_c), lambda i, j: (i, j)),
        compiler_params=pltpu.CompilerParams(
            dimension_semantics=("parallel", "parallel"),
        ),
        cost_estimate=pl.CostEstimate(
            flops=int(b_pad * c_pad),
            transcendentals=0,
            bytes_accessed=int(2 * b_pad * c_pad * out_item + b_pad * 4),
        ),
    )(logits_p, lse_p)

    return log_probs_p[:B, :C], logits_p[:B, :C]


if __name__ == "__main__":
    key = jax.random.PRNGKey(0)
    kx, kw, kb, kx2, kw2, kb2 = jax.random.split(key, 6)

    # --- Test 1: small head, resident-weight fused path (module-scale shapes). ---
    B, D, C = 8, 32, 16
    x = jax.random.normal(kx, (B, D), dtype=jnp.float32)
    bound = 1.0 / np.sqrt(D)
    weight = jax.random.uniform(kw, (C, D), minval=-bound, maxval=bound, dtype=jnp.float32)
    bias = jax.random.uniform(kb, (C,), minval=-bound, maxval=bound, dtype=jnp.float32)

    log_probs, logits = linear_logsoftmax_classifier(x, weight, bias)
    jax.block_until_ready((log_probs, logits))

    ref_logits = jnp.dot(x, weight.T, precision=jax.lax.Precision.HIGHEST) + bias
    ref_logp = jax.nn.log_softmax(ref_logits, axis=1)
    assert logits.shape == (B, C) and log_probs.shape == (B, C)
    assert jnp.allclose(logits, ref_logits, atol=1e-3, rtol=1e-3)
    assert jnp.allclose(log_probs, ref_logp, atol=1e-3, rtol=1e-3)

    # --- Test 2: class-axis-tiled path (what big / vocab-sized heads use on v7x). ---
    B2, D2, C2 = 24, 64, 320
    x2 = jax.random.normal(kx2, (B2, D2), dtype=jnp.float32)
    bound2 = 1.0 / np.sqrt(D2)
    weight2 = jax.random.uniform(kw2, (C2, D2), minval=-bound2, maxval=bound2, dtype=jnp.float32)
    bias2 = jax.random.uniform(kb2, (C2,), minval=-bound2, maxval=bound2, dtype=jnp.float32)

    log_probs2, logits2 = linear_logsoftmax_classifier(
        x2, weight2, bias2, force_class_tiling=True, class_tile=128)
    jax.block_until_ready((log_probs2, logits2))

    ref_logits2 = jnp.dot(x2, weight2.T, precision=jax.lax.Precision.HIGHEST) + bias2
    ref_logp2 = jax.nn.log_softmax(ref_logits2, axis=1)
    assert logits2.shape == (B2, C2) and log_probs2.shape == (B2, C2)
    assert jnp.allclose(logits2, ref_logits2, atol=1e-3, rtol=1e-3)
    assert jnp.allclose(log_probs2, ref_logp2, atol=1e-3, rtol=1e-3)

    print("KERNEL_OK")
</pallas_src>

<mosaic_0001>
module attributes {stable_mosaic.version = 11 : i64} {
  func.func @_fused_linear_logsoftmax_kernel(%arg0: i32, %arg1: memref<8x32xf32, #tpu.memory_space<vmem>>, %arg2: memref<32x128xf32, #tpu.memory_space<vmem>>, %arg3: memref<1x128xf32, #tpu.memory_space<vmem>>, %arg4: memref<8x128xf32, #tpu.memory_space<vmem>>, %arg5: memref<8x128xf32, #tpu.memory_space<vmem>>) attributes {dimension_semantics = [#tpu.dimension_semantics<parallel>], iteration_bounds = array<i64: 1>, scalar_prefetch = 0 : i64, scratch_operands = 0 : i64, tpu.core_type = #tpu.core_type<tc>, window_params = [{transform_indices = @transform_0, window_bounds = array<i64: 8, 32>}, {pipeline_mode = #tpu.pipeline_mode<synchronous>, transform_indices = @transform_1, window_bounds = array<i64: 32, 128>}, {pipeline_mode = #tpu.pipeline_mode<synchronous>, transform_indices = @transform_2, window_bounds = array<i64: 1, 128>}, {transform_indices = @transform_3, window_bounds = array<i64: 8, 128>}, {transform_indices = @transform_4, window_bounds = array<i64: 8, 128>}]} {
    %c0 = arith.constant 0 : index
    %c0_0 = arith.constant 0 : index
    %0 = vector.load %arg1[%c0, %c0_0] : memref<8x32xf32, #tpu.memory_space<vmem>>, vector<8x32xf32>
    %c0_1 = arith.constant 0 : index
    %c0_2 = arith.constant 0 : index
    %1 = vector.load %arg2[%c0_1, %c0_2] : memref<32x128xf32, #tpu.memory_space<vmem>>, vector<32x128xf32>
    %cst = arith.constant dense<0.000000e+00> : vector<8x128xf32>
    %2 = tpu.matmul %0, %1, %cst {dimension_numbers = #tpu.dot_dimension_numbers<[1], [0], [0], [1], [0, 0, 1, 1], [], []>} : vector<8x32xf32>, vector<32x128xf32>, vector<8x128xf32> -> vector<8x128xf32>
    %c0_3 = arith.constant 0 : index
    %c0_4 = arith.constant 0 : index
    %3 = vector.load %arg3[%c0_3, %c0_4] : memref<1x128xf32, #tpu.memory_space<vmem>>, vector<1x128xf32>
    %4 = vector.broadcast %3 : vector<1x128xf32> to vector<8x128xf32>
    %5 = arith.addf %2, %4 : vector<8x128xf32>
    %cst_5 = arith.constant dense<0xFF800000> : vector<8xf32>
    %6 = vector.multi_reduction <maximumf>, %5, %cst_5 [1] : vector<8x128xf32> to vector<8xf32>
    %7 = vector.shape_cast %6 : vector<8xf32> to vector<8x1xf32>
    %8 = vector.broadcast %7 : vector<8x1xf32> to vector<8x128xf32>
    %9 = arith.subf %5, %8 : vector<8x128xf32>
    %10 = math.exp %9 : vector<8x128xf32>
    %cst_6 = arith.constant dense<0.000000e+00> : vector<8xf32>
    %11 = vector.multi_reduction <add>, %10, %cst_6 [1] : vector<8x128xf32> to vector<8xf32>
    %12 = vector.shape_cast %11 : vector<8xf32> to vector<8x1xf32>
    %13 = math.log %12 : vector<8x1xf32>
    %14 = vector.broadcast %13 : vector<8x1xf32> to vector<8x128xf32>
    %15 = arith.subf %9, %14 : vector<8x128xf32>
    %c0_7 = arith.constant 0 : index
    %c0_8 = arith.constant 0 : index
    %16 = vector.load %arg4[%c0_7, %c0_8] : memref<8x128xf32, #tpu.memory_space<vmem>>, vector<8x128xf32>
    tpu.vector_store %arg4[%c0_7, %c0_8], %15 {strides = array<i32>} : memref<8x128xf32, #tpu.memory_space<vmem>>, vector<8x128xf32>,
    %c0_9 = arith.constant 0 : index
    %c0_10 = arith.constant 0 : index
    %17 = vector.load %arg5[%c0_9, %c0_10] : memref<8x128xf32, #tpu.memory_space<vmem>>, vector<8x128xf32>
    tpu.vector_store %arg5[%c0_9, %c0_10], %5 {strides = array<i32>} : memref<8x128xf32, #tpu.memory_space<vmem>>, vector<8x128xf32>,
    return
  }
  func.func @transform_0(%arg0: i32) -> (i32, i32) {
    %c0_i32 = arith.constant 0 : i32
    %c0_i32_0 = arith.constant 0 : i32
    return %arg0, %c0_i32 : i32, i32
  }
  func.func @transform_1(%arg0: i32) -> (i32, i32) {
    %c0_i32 = arith.constant 0 : i32
    %c0_i32_0 = arith.constant 0 : i32
    %c0_i32_1 = arith.constant 0 : i32
    return %c0_i32, %c0_i32_0 : i32, i32
  }
  func.func @transform_2(%arg0: i32) -> (i32, i32) {
    %c0_i32 = arith.constant 0 : i32
    %c0_i32_0 = arith.constant 0 : i32
    %c0_i32_1 = arith.constant 0 : i32
    return %c0_i32, %c0_i32_0 : i32, i32
  }
  func.func @transform_3(%arg0: i32) -> (i32, i32) {
    %c0_i32 = arith.constant 0 : i32
    %c0_i32_0 = arith.constant 0 : i32
    return %arg0, %c0_i32 : i32, i32
  }
  func.func @transform_4(%arg0: i32) -> (i32, i32) {
    %c0_i32 = arith.constant 0 : i32
    %c0_i32_0 = arith.constant 0 : i32
    return %arg0, %c0_i32 : i32, i32
  }
}

</mosaic_0001>

<bundles_post_ra>
// kernel: tpu_custom_call.1
= control target key start
LH: loop header
LB: loop body
LE: loop exit
PB: predicated region body
PF: predicated region fallthrough
CT: control target
= control target key end

     0   :  { %10 = vsyncpa [#allocation3], 0  ;;  %s397_s0 = inlined_call_operand.hbm [shape: f32[8,32], index: 0, kind: input, shape index: {}]   ;;  %s398_s1 = inlined_call_operand.hbm [shape: f32[32,128], index: 1, kind: input, shape index: {}]   ;;  %s399_s2 = inlined_call_operand.vmem [shape: f32[1,128], index: 2, kind: input, shape index: {}]   ;;  %s400_s3 = inlined_call_operand.hbm [shape: f32[8,128], index: 3, kind: output, shape index: {0}]   ;;  %s401_s4 = inlined_call_operand.hbm [shape: f32[8,128], index: 4, kind: output, shape index: {1}]  }
   0x1   :  { %11 = vsyncpa [#allocation6], 0 }
   0x2   :  { %12 = vsyncpa [#allocation4], 0 }
   0x3   :  { %13 = vsyncpa [#allocation9], 0  ;;  %s305_s15 = smov [#allocation2]   ;;  %s306_s17 = smov [#allocation5]  }
   0x4   :  { %s20_s16 = sshll.u32 %s305_s15, 4  ;;  %s29_s18 = sshll.u32 %s306_s17, 4  ;;  %s21_s16 = int_to_ptr.vmem [resolvable:$true] %s20_s16  ;;  %s339_s18 = int_to_ptr.vmem [resolvable:$true] %s29_s18 }
   0x5   :  { %s209_s21 = scalar_lea.hbm %s397_s0, 128 }
   0x6   :  { %p210_p0 = scmp.ne.s32.totalorder %s397_s0, %s209_s21  ;;  %p213_p1 = scmp.lt.u32.totalorder %s209_s21, %s397_s0 }
   0x8   :  { %p215_p2 = pnand %p213_p1, %p210_p0 }
   0xa   :  { %218 = shalt.err (!%p215_p2)
}
   0xb   :  { %s219_s26 = scalar_lea.vmem %s21_s16, 128  ;;  %p224_p4 = scmp.lt.s32.totalorder %s21_s16, %s21_s16 }
   0xc   :  { %p220_p3 = scmp.ne.s32.totalorder %s21_s16, %s219_s26  ;;  %p225_p5 = scmp.lt.s32.totalorder %s219_s26, %s219_s26 }
   0xe   :  { %p226_p6 = por %p225_p5, %p224_p4 }
  0x10   :  { %p227_p7 = pnand %p226_p6, %p220_p3 }
  0x12   :  { %230 = shalt.err (!%p227_p7)
}
  0x13   :  { %23 = dma.hbm_to_vmem [thread:$0]  %s397_s0, 128, %s21_s16, [#allocation3]  }
  0x14   :  { %s231_s5 = scalar_lea.hbm %s398_s1, 512 }
  0x15   :  { %p232_p8 = scmp.ne.s32.totalorder %s398_s1, %s231_s5  ;;  %p235_p9 = scmp.lt.u32.totalorder %s231_s5, %s398_s1 }
  0x17   :  { %p237_p10 = pnand %p235_p9, %p232_p8 }
  0x19   :  { %240 = shalt.err (!%p237_p10)
}
  0x1a   :  { %s241_s10 = scalar_lea.vmem %s339_s18, 512  ;;  %p246_p12 = scmp.lt.s32.totalorder %s339_s18, %s339_s18 }
  0x1b   :  { %p242_p11 = scmp.ne.s32.totalorder %s339_s18, %s241_s10  ;;  %p247_p13 = scmp.lt.s32.totalorder %s241_s10, %s241_s10 }
  0x1d   :  { %p248_p0 = por %p247_p13, %p246_p12 }
  0x1f   :  { %p249_p1 = pnand %p248_p0, %p242_p11 }
  0x21   :  { %252 = shalt.err (!%p249_p1)
}
  0x22   :  { %s307_s0 = smov 128   ;;  %s308_s11 = smov 8  }
  0x23   :  { %35 = dma.hbm_to_vmem [thread:$0]  %s398_s1, 512, %s339_s18, [#allocation6], %s307_s0, %s307_s0, %s308_s11  }
  0x24   :  { %297 = dma.done.wait [#allocation3], 128  }
  0x25   :  { %298 = vsyncadd [#allocation3], 4294967168 }
  0x26   :  { %299 = dma.done.wait [#allocation6], 512  }
  0x27   :  { %300 = vsyncadd [#allocation6], 4294966784  ;;  %v309_v0 = vmov 0.0|0.0   ;;  %vm310_vm0 = vmmov 0   ;;  %v311_v1 = vmov 0.0   ;;  %v45_v2 = vld [vmem:[#allocation5] sm:$0xff] }
  0x28   :  { %190 = vmatprep.subr.bf16.mxu0 %v309_v0  ;;  %187 = vmatprep.mubr.msk.f32.mxu0 %vm310_vm0, %v311_v1  ;;  %v46_v3 = vld [vmem:[#allocation5 + $0x8] sm:$0xff]  ;;  %v47_v4 = vld [vmem:[#allocation5 + $0x10] sm:$0xff]  ;;  %v48_v6 = vld [vmem:[#allocation5 + $0x18] sm:$0xff]  ;;  %vm56_vm1 = vcmask 261120   ;;  %s312_s15 = smov [#allocation8]  }
  0x29   :  { %v191_v5 = vpack.c.bf16 %v46_v3, %v45_v2  ;;  %v194_v7 = vpack.c.bf16 %v48_v6, %v47_v4  ;;  %v44_v8 = vld [vmem:[#allocation2] sm:$0xff]  ;;  %s158_s16 = sshll.u32 %s312_s15, 4  ;;  %s159_s16 = int_to_ptr.vmem [resolvable:$true] %s158_s16 }
  0x2a   :  { %v172_v9 = vld [vmem:[%s399_s2] ss:$0 sm:$0xff]  ;;  %s253_s17 = scalar_lea.vmem %s159_s16, 128  ;;  %p258_p3 = scmp.lt.s32.totalorder %s159_s16, %s159_s16 }
  0x2b   :  { %192 = vmatpush3.bf16.msra.mxu0 %v191_v5  ;;  %p254_p2 = scmp.ne.s32.totalorder %s159_s16, %s253_s17  ;;  %p259_p4 = scmp.lt.s32.totalorder %s253_s17, %s253_s17 }
  0x2c   :  { %193 = vmatprep.subr.bf16.mxu0 %v309_v0 }
  0x2d   :  { %p260_p5 = por %p259_p4, %p258_p3 }
  0x2f   :  { %195 = vmatpush3.bf16.msra.mxu0 %v194_v7  ;;  %p261_p6 = pnand %p260_p5, %p254_p2 }
  0x32   :  { %188 = vmatmul.mubr.msk.f32.vlgmr.msra.gmra.mrb[0].mxu0 %vm56_vm1, %v44_v8 }
 0x105   :  { %v126_v10 = vpop.f32.mrb[0].mxu0 }
 0x106   :  { %v127_v11 = vadd.f32 %v172_v9, %v126_v10  ;;  %v189_v12 = vpop.f32.mrb[1].mxu0 }
 0x108   :  { %141 = vst [vmem:[#allocation8] sm:$0xff] %v127_v11  ;;  %130 = vmax.xlane.f32.xlu0 %v127_v11 }
 0x195   :  { %v131_v13 = vpop.xlane.xlu0 %130 }
 0x196   :  { %v132_v14 = vsub.f32 %v127_v11, %v131_v13 }
 0x198   :  { %v133_v15 = vmul.f32 1.442695, %v132_v14 }
 0x19a   :  { %205 = vpow2.f32 %v133_v15 }
 0x1a4   :  { %v206_v16 = vpop.eup %205 }
 0x1a5   :  { %135 = vadd.xlane.f32.xlu0 %v206_v16 }
 0x1a6   :  { %264 = shalt.err (!%p261_p6)
}
 0x1a7   :  { %s265_s19 = scalar_lea.hbm %s401_s4, 128 }
 0x1a8   :  { %p266_p7 = scmp.ne.s32.totalorder %s401_s4, %s265_s19  ;;  %p269_p8 = scmp.lt.u32.totalorder %s265_s19, %s401_s4 }
 0x1aa   :  { %p271_p9 = pnand %p269_p8, %p266_p7 }
 0x1ac   :  { %274 = shalt.err (!%p271_p9)
}
 0x1ad   :  { %161 = dma.vmem_to_hbm [thread:$0]  %s159_s16, 128, %s401_s4, [#allocation9]  }
 0x1ae   :  { %s313_s26 = smov [#allocation7]  }
 0x1af   :  { %s148_s27 = sshll.u32 %s313_s26, 4  ;;  %s149_s27 = int_to_ptr.vmem [resolvable:$true] %s148_s27 }
 0x1b0   :  { %s275_s28 = scalar_lea.vmem %s149_s27, 128  ;;  %p280_p11 = scmp.lt.s32.totalorder %s149_s27, %s149_s27 }
 0x1b1   :  { %p276_p10 = scmp.ne.s32.totalorder %s149_s27, %s275_s28  ;;  %p281_p12 = scmp.lt.s32.totalorder %s275_s28, %s275_s28 }
 0x1b3   :  { %p282_p13 = por %p281_p12, %p280_p11 }
 0x1b5   :  { %p283_p0 = pnand %p282_p13, %p276_p10 }
 0x232   :  { %v136_v17 = vpop.xlane.xlu0 %135 }
 0x233   :  { %207 = vlog2.f32 %v136_v17 }
 0x23d   :  { %v208_v18 = vpop.eup %207 }
 0x23e   :  { %v138_v19 = vmul.f32 0.6931472, %v208_v18 }
 0x240   :  { %v139_v20 = vsub.f32 %v132_v14, %v138_v19 }
 0x242   :  { %140 = vst [vmem:[#allocation7] sm:$0xff] %v139_v20 }
 0x243   :  { %286 = shalt.err (!%p283_p0)
}
 0x244   :  { %s287_s4 = scalar_lea.hbm %s400_s3, 128 }
 0x245   :  { %p288_p1 = scmp.ne.s32.totalorder %s400_s3, %s287_s4  ;;  %p291_p2 = scmp.lt.u32.totalorder %s287_s4, %s400_s3 }
 0x247   :  { %p293_p3 = pnand %p291_p2, %p288_p1 }
 0x249   :  { %296 = shalt.err (!%p293_p3)
}
 0x24a   :  { %151 = dma.vmem_to_hbm [thread:$0]  %s149_s27, 128, %s400_s3, [#allocation4]  }
 0x24b   :  { %301 = dma.done.wait [#allocation4], 128  }
 0x24c   :  { %302 = vsyncadd [#allocation4], 4294967168 }
 0x24d   :  { %303 = dma.done.wait [#allocation9], 128  }
 0x24e   :  { %304 = vsyncadd [#allocation9], 4294967168 }
 0x24f   :  { %168 = vsyncpa [#allocation3], 1 }
 0x250   :  { %169 = vsyncpa [#allocation6], 1 }
 0x251   :  { %170 = vsyncpa [#allocation4], 1 }
 0x252   :  { %171 = vsyncpa [#allocation9], 1 }

</bundles_post_ra>
